<compile_context>
chip_gen: v7x
topology: tpu7x:2x2x1
jax: 0.10.0
libtpu: 0.0.40
codegen_flags: <defaults>
</compile_context>

<pallas_src>
import jax
import jax.numpy as jnp
from jax.experimental import pallas as pl
from jax.experimental.pallas import tpu as pltpu


_LANE = 128


def _chomp_copy_kernel(x_ref, o_ref):
    # Static slice: a no-op full-view copy when the input block width equals
    # the output block width (lane-aligned / column-tiled paths); drops the
    # chomped tail in VMEM on the full-width non-lane-aligned path.
    o_ref[...] = x_ref[:, : o_ref.shape[-1]]


def _round_down(x: int, m: int) -> int:
    return (x // m) * m


def _cdiv(a: int, b: int) -> int:
    return -(-a // b)


def _chip_budget():
    """Returns (per-block byte target, scoped-VMEM limit) per TPU generation."""
    try:
        kind = jax.devices()[0].device_kind.lower()
    except Exception:
        kind = ""
    if "v5 lite" in kind or "v5e" in kind or "v5litepod" in kind:
        return 4 * 2**20, 48 * 2**20      # v5e: ~0.82 TB/s HBM, 16 MiB default scope
    if "v6" in kind:                      # v6e / Trillium: 128 MiB physical VMEM
        return 8 * 2**20, 80 * 2**20
    if "v7" in kind:                      # v7x: only 64 MiB VMEM per TensorCore
        return 8 * 2**20, 48 * 2**20
    return 4 * 2**20, 48 * 2**20          # conservative default for unknown chips


def chomp1d(x: jax.Array, chomp_size: int, *, block_bytes: int | None = None) -> jax.Array:
    """Equivalent of Chomp1d(chomp_size)(x) for x of shape (N, C, L).

    `block_bytes` optionally overrides the per-block byte budget (testing only).
    """
    n, c, l = x.shape
    # NOTE: PyTorch's x[:, :, :-0] returns an empty tensor; chomp_size == 0 is
    # excluded here just like in the original module's intended use.
    assert 0 < chomp_size < l, "chomp_size must be in (0, L)"
    l_out = l - chomp_size

    # Tiny outputs: sub-128-lane Pallas output blocks force masked partial
    # stores and fixed dispatch/pipeline overhead dominates a small memcpy,
    # so let XLA's slice-copy handle it.
    if l_out < _LANE:
        return x[:, :, :l_out]

    r = n * c
    x2 = x.reshape(r, l)  # free: (N, C, L) is contiguous row-major

    itemsize = jnp.dtype(x.dtype).itemsize
    sub = max(8, 32 // itemsize)           # sublane multiple: 8 f32, 16 bf16, 32 int8
    target_bytes, vmem_limit = _chip_budget()
    if block_bytes is not None:
        target_bytes = int(block_bytes)

    min_rows = max(1, min(r, sub))
    # Input block width if we take a full-width output column tile.
    tl_in_full = l_out if (l_out % _LANE == 0) else l

    if min_rows * tl_in_full * itemsize <= target_bytes:
        # Full-width column tile: contiguous, unmasked lane-dense output
        # stores; single column block -> 1-D grid over rows.
        tl = l_out
        tl_in = tl_in_full
    else:
        # Very long rows: tile columns.  Same lane tile and index_map on input
        # and output, so the chomped tail is never DMA'd.
        lane_budget = max(_LANE, _round_down(target_bytes // (min_rows * itemsize), _LANE))
        tl = min(_round_down(l_out, _LANE), lane_budget)
        tl_in = tl

    # Row tile: budget off the INPUT block width (>= output width) so the
    # double-buffered in+out pipeline stays inside the scoped-VMEM limit.
    if r <= sub:
        tr = r
    else:
        rows_cap = max(sub, _round_down(target_bytes // (tl_in * itemsize), sub))
        tr = max(sub, min(_round_down(r, sub), rows_cap))
        # Guarantee >= 2 row blocks so megacore (v7x) can split the copy.
        half = _round_down(_cdiv(r, 2), sub)
        if half >= sub:
            tr = min(tr, half)

    grid_rows = _cdiv(r, tr)
    grid_cols = _cdiv(l_out, tl)

    if grid_cols == 1:
        grid = (grid_rows,)
        in_specs = [pl.BlockSpec((tr, tl_in), lambda i: (i, 0))]
        out_specs = pl.BlockSpec((tr, tl), lambda i: (i, 0))
        dims = ("parallel",)
    else:
        grid = (grid_rows, grid_cols)
        in_specs = [pl.BlockSpec((tr, tl_in), lambda i, j: (i, j))]
        out_specs = pl.BlockSpec((tr, tl), lambda i, j: (i, j))
        dims = ("parallel", "parallel")

    out2 = pl.pallas_call(
        _chomp_copy_kernel,
        out_shape=jax.ShapeDtypeStruct((r, l_out), x.dtype),
        grid_spec=pltpu.PrefetchScalarGridSpec(
            num_scalar_prefetch=0,
            grid=grid,
            in_specs=in_specs,
            out_specs=out_specs,
        ),
        compiler_params=pltpu.CompilerParams(
            dimension_semantics=dims,
            vmem_limit_bytes=vmem_limit,
        ),
        cost_estimate=pl.CostEstimate(
            flops=0,
            transcendentals=0,
            bytes_accessed=2 * r * l_out * itemsize,
        ),
    )(x2)

    return out2.reshape(n, c, l_out)


if __name__ == "__main__":
    key = jax.random.PRNGKey(0)

    # 1) Lane-aligned full-width path (L_out multiple of 128): the chomped
    #    tail is never DMA'd, single contiguous output block per row tile.
    N, C, L, chomp = 2, 4, 272, 16          # L_out = 256
    x = jax.random.normal(key, (N, C, L), dtype=jnp.float32)
    out = jax.block_until_ready(chomp1d(x, chomp))
    ref = x[:, :, :-chomp]
    assert out.shape == (N, C, L - chomp)
    assert jnp.array_equal(out, ref)

    # 2) Full-width path with non-lane-aligned L_out (input block = full row,
    #    tail dropped by the static in-VMEM slice).
    N2, C2, L2, chomp2 = 2, 8, 200, 13      # L_out = 187
    x2 = jax.random.normal(jax.random.PRNGKey(0), (N2, C2, L2), dtype=jnp.float32)
    out2 = jax.block_until_ready(chomp1d(x2, chomp2))
    ref2 = x2[:, :, :-chomp2]
    assert out2.shape == (N2, C2, L2 - chomp2)
    assert jnp.array_equal(out2, ref2)

    # 3) Column-tiled path with a ragged last column tile (forced with a tiny
    #    per-block byte budget so the test stays small).
    N3, C3, L3, chomp3 = 2, 8, 628, 128     # L_out = 500
    x3 = jax.random.normal(jax.random.PRNGKey(0), (N3, C3, L3), dtype=jnp.float32)
    out3 = jax.block_until_ready(chomp1d(x3, chomp3, block_bytes=8192))
    ref3 = x3[:, :, :-chomp3]
    assert out3.shape == (N3, C3, L3 - chomp3)
    assert jnp.array_equal(out3, ref3)

    # 4) Tiny-L case (L_out < 128): served by the XLA slice-copy fast path.
    N4, C4, L4, chomp4 = 2, 4, 16, 3        # L_out = 13
    x4 = jax.random.normal(jax.random.PRNGKey(0), (N4, C4, L4), dtype=jnp.float32)
    out4 = jax.block_until_ready(chomp1d(x4, chomp4))
    ref4 = x4[:, :, :-chomp4]
    assert out4.shape == (N4, C4, L4 - chomp4)
    assert jnp.array_equal(out4, ref4)

    print("KERNEL_OK")
</pallas_src>

<mosaic_0001>
module attributes {stable_mosaic.version = 11 : i64} {
  func.func @_chomp_copy_kernel(%arg0: i32, %arg1: memref<8x256xf32, #tpu.memory_space<vmem>>, %arg2: memref<8x256xf32, #tpu.memory_space<vmem>>) attributes {dimension_semantics = [#tpu.dimension_semantics<parallel>], iteration_bounds = array<i64: 1>, scalar_prefetch = 0 : i64, scratch_operands = 0 : i64, tpu.core_type = #tpu.core_type<tc>, window_params = [{transform_indices = @transform_0, window_bounds = array<i64: 8, 256>}, {transform_indices = @transform_1, window_bounds = array<i64: 8, 256>}]} {
    %c0 = arith.constant 0 : index
    %c0_0 = arith.constant 0 : index
    %0 = vector.load %arg1[%c0, %c0_0] : memref<8x256xf32, #tpu.memory_space<vmem>>, vector<8x256xf32>
    %c0_1 = arith.constant 0 : index
    %c0_2 = arith.constant 0 : index
    %1 = vector.load %arg2[%c0_1, %c0_2] : memref<8x256xf32, #tpu.memory_space<vmem>>, vector<8x256xf32>
    tpu.vector_store %arg2[%c0_1, %c0_2], %0 {strides = array<i32>} : memref<8x256xf32, #tpu.memory_space<vmem>>, vector<8x256xf32>,
    return
  }
  func.func @transform_0(%arg0: i32) -> (i32, i32) {
    %c0_i32 = arith.constant 0 : i32
    %c0_i32_0 = arith.constant 0 : i32
    return %arg0, %c0_i32 : i32, i32
  }
  func.func @transform_1(%arg0: i32) -> (i32, i32) {
    %c0_i32 = arith.constant 0 : i32
    %c0_i32_0 = arith.constant 0 : i32
    return %arg0, %c0_i32 : i32, i32
  }
}

</mosaic_0001>

<bundles_post_ra>
// kernel: tpu_custom_call.1
= control target key start
LH: loop header
LB: loop body
LE: loop exit
PB: predicated region body
PF: predicated region fallthrough
CT: control target
= control target key end

     0   :  { %6 = vsyncpa [#allocation3], 0  ;;  %s129_s0 = inlined_call_operand.hbm [shape: f32[8,272], index: 0, kind: input, shape index: {}]   ;;  %s130_s1 = inlined_call_operand.hbm [shape: f32[8,256], index: 1, kind: output, shape index: {}]  }
   0x1   :  { %7 = vsyncpa [#allocation4], 0  ;;  %s90_s6 = smov [#allocation2]   ;;  %s42_s10 = scalar_lea.hbm %s129_s0, 256 }
   0x2   :  { %s14_s7 = sshll.u32 %s90_s6, 4  ;;  %p43_p0 = scmp.ne.s32.totalorder %s129_s0, %s42_s10  ;;  %s15_s7 = int_to_ptr.vmem [resolvable:$true] %s14_s7 }
   0x3   :  { %s44_s15 = scalar_lea.hbm %s129_s0, 384  ;;  %p46_p2 = scmp.lt.u32.totalorder %s42_s10, %s129_s0 }
   0x4   :  { %p45_p1 = scmp.lt.u32.totalorder %s44_s15, %s42_s10 }
   0x6   :  { %p47_p3 = por %p46_p2, %p45_p1 }
   0x8   :  { %p48_p4 = pnand %p47_p3, %p43_p0 }
   0xa   :  { %51 = shalt.err (!%p48_p4)
}
   0xb   :  { %s52_s18 = scalar_lea.vmem %s15_s7, 256  ;;  %p57_p6 = scmp.lt.s32.totalorder %s15_s7, %s15_s7 }
   0xc   :  { %p53_p5 = scmp.ne.s32.totalorder %s15_s7, %s52_s18  ;;  %p58_p7 = scmp.lt.s32.totalorder %s52_s18, %s52_s18 }
   0xe   :  { %p59_p8 = por %p58_p7, %p57_p6 }
  0x10   :  { %p60_p9 = pnand %p59_p8, %p53_p5 }
  0x12   :  { %63 = shalt.err (!%p60_p9)
}
  0x13   :  { %17 = dma.hbm_to_vmem [thread:$0]  %s129_s0, 256, %s15_s7, [#allocation3]  }
  0x14   :  { %86 = dma.done.wait [#allocation3], 256  }
  0x15   :  { %87 = vsyncadd [#allocation3], 4294967040  ;;  %s91_s21 = smov [#allocation5]   ;;  %v21_v0 = vld [vmem:[#allocation2] sm:$0xff]  ;;  %v22_v1 = vld [vmem:[#allocation2 + $0x8] sm:$0xff] }
  0x16   :  { %s31_s22 = sshll.u32 %s91_s21, 4  ;;  %23 = vst [vmem:[#allocation5] sm:$0xff] %v21_v0  ;;  %24 = vst [vmem:[#allocation5 + $0x8] sm:$0xff] %v22_v1  ;;  %s32_s22 = int_to_ptr.vmem [resolvable:$true] %s31_s22 }
  0x17   :  { %s64_s23 = scalar_lea.vmem %s32_s22, 256  ;;  %p69_p11 = scmp.lt.s32.totalorder %s32_s22, %s32_s22 }
  0x18   :  { %p65_p10 = scmp.ne.s32.totalorder %s32_s22, %s64_s23  ;;  %p70_p12 = scmp.lt.s32.totalorder %s64_s23, %s64_s23 }
  0x1a   :  { %p71_p13 = por %p70_p12, %p69_p11 }
  0x1c   :  { %p72_p0 = pnand %p71_p13, %p65_p10 }
  0x1e   :  { %75 = shalt.err (!%p72_p0)
}
  0x1f   :  { %s76_s0 = scalar_lea.hbm %s130_s1, 256 }
  0x20   :  { %p77_p1 = scmp.ne.s32.totalorder %s130_s1, %s76_s0  ;;  %p80_p2 = scmp.lt.u32.totalorder %s76_s0, %s130_s1 }
  0x22   :  { %p82_p3 = pnand %p80_p2, %p77_p1 }
  0x24   :  { %85 = shalt.err (!%p82_p3)
}
  0x25   :  { %34 = dma.vmem_to_hbm [thread:$0]  %s32_s22, 256, %s130_s1, [#allocation4]  }
  0x26   :  { %88 = dma.done.wait [#allocation4], 256  }
  0x27   :  { %89 = vsyncadd [#allocation4], 4294967040 }
  0x28   :  { %38 = vsyncpa [#allocation3], 1 }
  0x29   :  { %39 = vsyncpa [#allocation4], 1 }

</bundles_post_ra>
